<compile_context>
chip_gen: v5e
topology: v5e:2x2
jax: 0.10.0
libtpu: 0.0.40
codegen_flags: <defaults>
</compile_context>

<pallas_src>
import functools

import jax
import jax.numpy as jnp
from jax.experimental import pallas as pl
from jax.experimental.pallas import tpu as pltpu


def _round_up(x, m):
    return ((x + m - 1) // m) * m


# ----------------------------------------------------------------------------
# Pallas kernel: sum_i( CE_i * w_i ), divided by N on the last grid step
# ----------------------------------------------------------------------------
def _wce_kernel(x_ref, t_ref, w_ref, out_ref, *, ignore_index, n_rows):
    step = pl.program_id(0)

    @pl.when(step == 0)
    def _():
        out_ref[...] = jnp.zeros_like(out_ref)

    x = x_ref[...]                                   # (tm, C)  f32 logits
    t = t_ref[...]                                   # (tm, 1)  int32 targets
    w = w_ref[...]                                   # (tm, 1)  f32 weights
    tm = x.shape[0]

    # numerically-stable log-sum-exp over the class (lane) axis
    m = jnp.max(x, axis=-1, keepdims=True)                       # (tm, 1)
    lse = m + jnp.log(jnp.sum(jnp.exp(x - m), axis=-1, keepdims=True))

    # x[i, t_i] via one-hot compare against a broadcasted iota (no gather)
    cls = jax.lax.broadcasted_iota(jnp.int32, x.shape, 1)        # (tm, C)
    x_t = jnp.sum(jnp.where(cls == t, x, 0.0), axis=-1, keepdims=True)

    # mask rows past N (boundary-block padding) and ignore_index rows;
    # jnp.where drops any garbage/NaN from out-of-bounds padding rows.
    row = jax.lax.broadcasted_iota(jnp.int32, (tm, 1), 0) + step * tm
    keep = (row < n_rows) & (t != ignore_index)
    contrib = jnp.where(keep, (lse - x_t) * w, 0.0)              # (tm, 1)

    out_ref[...] += jnp.sum(contrib)

    # torch.mean divides by the full batch size (ignored samples included)
    @pl.when(step == pl.num_programs(0) - 1)
    def _():
        out_ref[...] = out_ref[...] * jnp.float32(1.0 / n_rows)


# ----------------------------------------------------------------------------
# Wrapper: tiling + pallas_call (no host-side padding of the logits)
# ----------------------------------------------------------------------------
def weighted_cross_entropy_loss(inputs, targets, weights=None, ignore_index=-100):
    """
    inputs  : (N, C) float logits
    targets : (N,)   int   class indices (ignore_index entries contribute 0)
    weights : (N,)   float per-sample weights, or None (-> plain mean)
    returns : scalar float32 loss = mean_i( CE_i * w_i )  (mean over all N)
    """
    inputs = jnp.asarray(inputs)
    if inputs.dtype != jnp.float32:
        inputs = inputs.astype(jnp.float32)
    N, C = inputs.shape

    targets = jnp.asarray(targets, jnp.int32).reshape(N, 1)
    if weights is None:
        weights = jnp.ones((N,), jnp.float32)
    weights = jnp.asarray(weights, jnp.float32).reshape(N, 1)

    # Row tile sized from the VMEM footprint of one double-buffered step:
    #   logits tile   : tm * round_up(C, 128) * 4 bytes   (lane-padded in VMEM)
    #   target/weight : tm * 128 * 4 bytes each           (lane-padded columns)
    c_vmem = _round_up(C, 128)
    per_row_bytes = 2 * (c_vmem + 2 * 128) * 4            # x2 for double buffering
    budget_bytes = 12 * 1024 * 1024
    tm_cap = max(8, ((budget_bytes // per_row_bytes) // 8) * 8)
    tm = min(tm_cap, _round_up(N, 8))
    grid = (pl.cdiv(N, tm),)

    kernel = functools.partial(_wce_kernel, ignore_index=int(ignore_index), n_rows=N)
    total = pl.pallas_call(
        kernel,
        out_shape=jax.ShapeDtypeStruct((1, 1), jnp.float32),
        grid=grid,
        in_specs=[
            pl.BlockSpec((tm, C), lambda i: (i, 0)),   # last dim == full C is legal
            pl.BlockSpec((tm, 1), lambda i: (i, 0)),
            pl.BlockSpec((tm, 1), lambda i: (i, 0)),
        ],
        out_specs=pl.BlockSpec((1, 1), lambda i: (0, 0)),
        compiler_params=pltpu.CompilerParams(
            dimension_semantics=("arbitrary",),        # reduction into resident block
            vmem_limit_bytes=32 * 1024 * 1024,
        ),
    )(inputs, targets, weights)

    return total[0, 0]


# ----------------------------------------------------------------------------
# Module mirroring the PyTorch class
# ----------------------------------------------------------------------------
class WeightedCrossEntropyLoss:
    def __init__(self, ignore_index=-100):
        self.ignore_index = ignore_index

    def __call__(self, inputs, targets, weights=None):
        assert inputs.shape[0] == targets.shape[0]
        if weights is not None:
            assert weights.shape[0] == inputs.shape[0]
        return weighted_cross_entropy_loss(
            inputs, targets, weights, ignore_index=self.ignore_index)


# ----------------------------------------------------------------------------
if __name__ == "__main__":
    key = jax.random.PRNGKey(0)
    k1, k2, k3 = jax.random.split(key, 3)

    N, C = 64, 10
    ignore_index = -100

    inputs = jax.random.normal(k1, (N, C), jnp.float32)
    targets = jax.random.randint(k2, (N,), 0, C, jnp.int32)
    targets = targets.at[::7].set(ignore_index)          # some ignored samples
    weights = jax.random.uniform(k3, (N,), jnp.float32, minval=0.5, maxval=1.5)

    criterion = WeightedCrossEntropyLoss(ignore_index=ignore_index)
    loss = criterion(inputs, targets, weights)
    jax.block_until_ready(loss)

    # pure-JAX reference (matches F.cross_entropy(reduction='none') * w, mean)
    lse = jax.scipy.special.logsumexp(inputs, axis=-1)
    safe_t = jnp.clip(targets, 0, C - 1)
    x_t = jnp.take_along_axis(inputs, safe_t[:, None], axis=-1)[:, 0]
    ce = jnp.where(targets != ignore_index, lse - x_t, 0.0)
    ref = jnp.mean(ce * weights)

    assert loss.shape == ()
    assert jnp.allclose(loss, ref, rtol=1e-5, atol=1e-5), (float(loss), float(ref))
    print("KERNEL_OK")
</pallas_src>

<mosaic_0001>
module attributes {stable_mosaic.version = 11 : i64} {
  func.func @_wce_kernel(%arg0: i32, %arg1: memref<64x10xf32, #tpu.memory_space<vmem>>, %arg2: memref<64x1xi32, #tpu.memory_space<vmem>>, %arg3: memref<64x1xf32, #tpu.memory_space<vmem>>, %arg4: memref<1x1xf32, #tpu.memory_space<vmem>>) attributes {dimension_semantics = [#tpu.dimension_semantics<arbitrary>], iteration_bounds = array<i64: 1>, scalar_prefetch = 0 : i64, scratch_operands = 0 : i64, tpu.core_type = #tpu.core_type<tc>, window_params = [{transform_indices = @transform_0, window_bounds = array<i64: 64, 10>}, {transform_indices = @transform_1, window_bounds = array<i64: 64, 1>}, {transform_indices = @transform_2, window_bounds = array<i64: 64, 1>}, {pipeline_mode = #tpu.pipeline_mode<synchronous>, transform_indices = @transform_3, window_bounds = array<i64: 1, 1>}]} {
    %c0_i32 = arith.constant 0 : i32
    %0 = arith.cmpi eq, %arg0, %c0_i32 : i32
    %1 = arith.extui %0 : i1 to i32
    %c0_i32_0 = arith.constant 0 : i32
    %2 = arith.cmpi ne, %1, %c0_i32_0 : i32
    scf.if %2 {
      %cst_18 = arith.constant 0.000000e+00 : f32
      %46 = vector.broadcast %cst_18 : f32 to vector<1x1xf32>
      %c0_19 = arith.constant 0 : index
      %c0_20 = arith.constant 0 : index
      %47 = vector.load %arg4[%c0_19, %c0_20] : memref<1x1xf32, #tpu.memory_space<vmem>>, vector<1x1xf32>
      tpu.vector_store %arg4[%c0_19, %c0_20], %46 {strides = array<i32>} : memref<1x1xf32, #tpu.memory_space<vmem>>, vector<1x1xf32>,
    } else {
    }
    %c0 = arith.constant 0 : index
    %c0_1 = arith.constant 0 : index
    %3 = vector.load %arg1[%c0, %c0_1] : memref<64x10xf32, #tpu.memory_space<vmem>>, vector<64x10xf32>
    %c0_2 = arith.constant 0 : index
    %c0_3 = arith.constant 0 : index
    %4 = vector.load %arg2[%c0_2, %c0_3] : memref<64x1xi32, #tpu.memory_space<vmem>>, vector<64x1xi32>
    %c0_4 = arith.constant 0 : index
    %c0_5 = arith.constant 0 : index
    %5 = vector.load %arg3[%c0_4, %c0_5] : memref<64x1xf32, #tpu.memory_space<vmem>>, vector<64x1xf32>
    %cst = arith.constant dense<0xFF800000> : vector<64xf32>
    %6 = vector.multi_reduction <maximumf>, %3, %cst [1] : vector<64x10xf32> to vector<64xf32>
    %7 = vector.shape_cast %6 : vector<64xf32> to vector<64x1xf32>
    %8 = vector.broadcast %7 : vector<64x1xf32> to vector<64x10xf32>
    %9 = arith.subf %3, %8 : vector<64x10xf32>
    %10 = math.exp %9 : vector<64x10xf32>
    %cst_6 = arith.constant dense<0.000000e+00> : vector<64xf32>
    %11 = vector.multi_reduction <add>, %10, %cst_6 [1] : vector<64x10xf32> to vector<64xf32>
    %12 = vector.shape_cast %11 : vector<64xf32> to vector<64x1xf32>
    %13 = math.log %12 : vector<64x1xf32>
    %14 = arith.addf %7, %13 : vector<64x1xf32>
    %15 = tpu.iota {dimensions = array<i32: 1>} : vector<64x10xi32>
    %16 = vector.broadcast %4 : vector<64x1xi32> to vector<64x10xi32>
    %17 = arith.cmpi eq, %15, %16 : vector<64x10xi32>
    %cst_7 = arith.constant 0.000000e+00 : f32
    %18 = vector.broadcast %cst_7 : f32 to vector<64x10xf32>
    %19 = arith.select %17, %3, %18 : vector<64x10xi1>, vector<64x10xf32>
    %cst_8 = arith.constant dense<0.000000e+00> : vector<64xf32>
    %20 = vector.multi_reduction <add>, %19, %cst_8 [1] : vector<64x10xf32> to vector<64xf32>
    %21 = vector.shape_cast %20 : vector<64xf32> to vector<64x1xf32>
    %22 = tpu.iota {dimensions = array<i32: 0>} : vector<64x1xi32>
    %c64_i32 = arith.constant 64 : i32
    %23 = arith.muli %arg0, %c64_i32 : i32
    %24 = vector.broadcast %23 : i32 to vector<64x1xi32>
    %25 = arith.addi %22, %24 : vector<64x1xi32>
    %c64_i32_9 = arith.constant 64 : i32
    %26 = vector.broadcast %c64_i32_9 : i32 to vector<64x1xi32>
    %27 = arith.cmpi slt, %25, %26 : vector<64x1xi32>
    %c-100_i32 = arith.constant -100 : i32
    %28 = vector.broadcast %c-100_i32 : i32 to vector<64x1xi32>
    %29 = arith.cmpi ne, %4, %28 : vector<64x1xi32>
    %30 = arith.andi %27, %29 : vector<64x1xi1>
    %31 = arith.subf %14, %21 : vector<64x1xf32>
    %32 = arith.mulf %31, %5 : vector<64x1xf32>
    %cst_10 = arith.constant 0.000000e+00 : f32
    %33 = vector.broadcast %cst_10 : f32 to vector<64x1xf32>
    %34 = arith.select %30, %32, %33 : vector<64x1xi1>, vector<64x1xf32>
    %c0_11 = arith.constant 0 : index
    %c0_12 = arith.constant 0 : index
    %35 = vector.load %arg4[%c0_11, %c0_12] : memref<1x1xf32, #tpu.memory_space<vmem>>, vector<1x1xf32>
    %36 = vector.shape_cast %34 : vector<64x1xf32> to vector<1x64x1xf32>
    %cst_13 = arith.constant dense<0.000000e+00> : vector<1xf32>
    %37 = vector.multi_reduction <add>, %36, %cst_13 [1, 2] : vector<1x64x1xf32> to vector<1xf32>
    %38 = vector.shape_cast %37 : vector<1xf32> to vector<1x1x1xf32>
    %39 = vector.extract %38[0, 0, 0] : f32 from vector<1x1x1xf32>
    %40 = vector.broadcast %39 : f32 to vector<1x1xf32>
    %41 = arith.addf %35, %40 : vector<1x1xf32>
    %c0_14 = arith.constant 0 : index
    %c0_15 = arith.constant 0 : index
    %42 = vector.load %arg4[%c0_14, %c0_15] : memref<1x1xf32, #tpu.memory_space<vmem>>, vector<1x1xf32>
    tpu.vector_store %arg4[%c0_14, %c0_15], %41 {strides = array<i32>} : memref<1x1xf32, #tpu.memory_space<vmem>>, vector<1x1xf32>,
    %c0_i32_16 = arith.constant 0 : i32
    %43 = arith.cmpi eq, %arg0, %c0_i32_16 : i32
    %44 = arith.extui %43 : i1 to i32
    %c0_i32_17 = arith.constant 0 : i32
    %45 = arith.cmpi ne, %44, %c0_i32_17 : i32
    scf.if %45 {
      %c0_18 = arith.constant 0 : index
      %c0_19 = arith.constant 0 : index
      %46 = vector.load %arg4[%c0_18, %c0_19] : memref<1x1xf32, #tpu.memory_space<vmem>>, vector<1x1xf32>
      %cst_20 = arith.constant 1.562500e-02 : f32
      %47 = vector.broadcast %cst_20 : f32 to vector<1x1xf32>
      %48 = arith.mulf %46, %47 : vector<1x1xf32>
      %c0_21 = arith.constant 0 : index
      %c0_22 = arith.constant 0 : index
      %49 = vector.load %arg4[%c0_21, %c0_22] : memref<1x1xf32, #tpu.memory_space<vmem>>, vector<1x1xf32>
      tpu.vector_store %arg4[%c0_21, %c0_22], %48 {strides = array<i32>} : memref<1x1xf32, #tpu.memory_space<vmem>>, vector<1x1xf32>,
    } else {
    }
    return
  }
  func.func @transform_0(%arg0: i32) -> (i32, i32) {
    %c0_i32 = arith.constant 0 : i32
    %c0_i32_0 = arith.constant 0 : i32
    return %arg0, %c0_i32 : i32, i32
  }
  func.func @transform_1(%arg0: i32) -> (i32, i32) {
    %c0_i32 = arith.constant 0 : i32
    %c0_i32_0 = arith.constant 0 : i32
    return %arg0, %c0_i32 : i32, i32
  }
  func.func @transform_2(%arg0: i32) -> (i32, i32) {
    %c0_i32 = arith.constant 0 : i32
    %c0_i32_0 = arith.constant 0 : i32
    return %arg0, %c0_i32 : i32, i32
  }
  func.func @transform_3(%arg0: i32) -> (i32, i32) {
    %c0_i32 = arith.constant 0 : i32
    %c0_i32_0 = arith.constant 0 : i32
    %c0_i32_1 = arith.constant 0 : i32
    return %c0_i32, %c0_i32_0 : i32, i32
  }
}

</mosaic_0001>

<bundles_post_ra>
// kernel: tpu_custom_call.1
= control target key start
LH: loop header
LB: loop body
LE: loop exit
PB: predicated region body
PF: predicated region fallthrough
CT: control target
= control target key end

     0   :  { %vm45_vm0 = vcmask 80896   ;;  %v393_v6 = vmov 0   ;;  %s640_s0 = inlined_call_operand.vmem [shape: f32[64,10], index: 0, kind: input, shape index: {}]   ;;  %s641_s1 = inlined_call_operand.vmem [shape: s32[64,1], index: 1, kind: input, shape index: {}]   ;;  %s642_s2 = inlined_call_operand.vmem [shape: f32[64,1], index: 2, kind: input, shape index: {}]   ;;  %s643_s3 = inlined_call_operand.hbm [shape: f32[1,1], index: 3, kind: output, shape index: {}]  }
   0x1   :  { %v419_v0 = vld [vmem:[%s640_s0 + $0x20] sm:$0xff]  ;;  %v424_v1 = vld [vmem:[%s640_s0 + $0x10] sm:$0xff]  ;;  %332 = vset.pattern.permute.xlu2 %v393_v6  ;;  %333 = vset.pattern.permute.xlu0 %v393_v6 }
   0x2   :  { %v429_v2 = vld [vmem:[%s640_s0] sm:$0xff]  ;;  %v58_v3 = vsel %vm45_vm0, %v419_v0, -inf  ;;  %v52_v4 = vsel %vm45_vm0, %v424_v1, -inf  ;;  %334 = vset.pattern.permute.xlu1 %v393_v6 }
   0x3   :  { %v46_v5 = vsel %vm45_vm0, %v429_v2, -inf  ;;  %59 = vmax.xlane.f32.xlu2 %v58_v3  ;;  %53 = vmax.xlane.f32.xlu1 %v52_v4 }
   0x4   :  { %47 = vmax.xlane.f32.xlu0 %v46_v5 }
   0x5   :  { %8 = vsyncpa [#allocation3], 0  ;;  %v440_v7 = vld [vmem:[%s640_s0 + $0x28] sm:$0xff]  ;;  %v445_v8 = vld [vmem:[%s640_s0 + $0x18] sm:$0xff]  ;;  %v142_v32 = vlaneseq  ;;  %vm276_vm11 = vcmask 7168   ;;  %s395_s4 = smov [#allocation2]  }
   0x6   :  { %v450_v9 = vld [vmem:[%s640_s0 + $0x8] sm:$0xff]  ;;  %v61_v10 = vsel %vm45_vm0, %v440_v7, -inf  ;;  %v55_v11 = vsel %vm45_vm0, %v445_v8, -inf  ;;  %v461_v13 = vld [vmem:[%s640_s0 + $0x38] sm:$0xff]  ;;  %v466_v14 = vld [vmem:[%s640_s0 + $0x30] sm:$0xff]  ;;  %s316_s0 = sshll.u32 %s395_s4, 4  ;;  %s317_s0 = int_to_ptr.vmem [resolvable:$true] %s316_s0 }
   0x7   :  { %v49_v12 = vsel %vm45_vm0, %v450_v9, -inf  ;;  %v67_v15 = vsel %vm45_vm0, %v461_v13, -inf  ;;  %v64_v16 = vsel %vm45_vm0, %v466_v14, -inf  ;;  %v475_v17 = vld [vmem:[%s641_s1] sm:$0xff]  ;;  %v481_v18 = vld [vmem:[%s641_s1 + $0x8] sm:$0xff]  ;;  %v487_v19 = vld [vmem:[%s641_s1 + $0x18] sm:$0xff] }
   0x8   :  { %v492_v20 = vld [vmem:[%s641_s1 + $0x10] sm:$0xff]  ;;  %v499_v21 = vld [vmem:[%s641_s1 + $0x20] sm:$0xff]  ;;  %v504_v22 = vld [vmem:[%s641_s1 + $0x28] sm:$0xff]  ;;  %v538_v37 = vand.u32 127, %v142_v32  ;;  %vm235_vm9 = vcmp.ne.s32.totalorder %v475_v17, 4294967196  ;;  %vm236_vm10 = vcmp.ne.s32.totalorder %v481_v18, 4294967196 }
   0x9   :  { %v511_v23 = vld [vmem:[%s641_s1 + $0x30] sm:$0xff]  ;;  %v516_v24 = vld [vmem:[%s641_s1 + $0x38] sm:$0xff]  ;;  %vm237_vm12 = vcmp.ne.s32.totalorder %v492_v20, 4294967196  ;;  %vm238_vm13 = vcmp.ne.s32.totalorder %v487_v19, 4294967196  ;;  %vm239_vm14 = vcmp.ne.s32.totalorder %v499_v21, 4294967196  ;;  %vm240_vm15 = vcmp.ne.s32.totalorder %v504_v22, 4294967196 }
   0xa   :  { %s318_s7 = sshll.u32 %s643_s3, 4  ;;  %s319_s7 = int_to_ptr.hbm [resolvable:$true] %s318_s7 }
   0xb   :  { %62 = vmax.xlane.f32.xlu2 %v61_v10  ;;  %56 = vmax.xlane.f32.xlu1 %v55_v11 }
   0xc   :  { %50 = vmax.xlane.f32.xlu0 %v49_v12 }
  0x13   :  { %68 = vmax.xlane.f32.xlu1 %v67_v15 }
  0x14   :  { %65 = vmax.xlane.f32.xlu0 %v64_v16 }
  0x23   :  { %145 = vperm.xlu2 %332, %v475_v17  }
  0x28   :  { %148 = vperm.xlu0 %333, %v481_v18  }
  0x2b   :  { %154 = vperm.xlu2 %332, %v487_v19  }
  0x2c   :  { %151 = vperm.xlu1 %334, %v492_v20  }
  0x33   :  { %157 = vperm.xlu2 %332, %v499_v21  }
  0x34   :  { %160 = vperm.xlu1 %334, %v504_v22   ;;  %v43_v22 = vld [vmem:[%s642_s2 + $0x30] sm:$0xff] }
  0x3b   :  { %163 = vperm.xlu2 %332, %v511_v23  }
  0x3c   :  { %166 = vperm.xlu1 %334, %v516_v24  }
  0x76   :  { %v520_v25 = vpop.xlane.xlu2 %59  ;;  %v522_v26 = vpop.xlane.xlu1 %53 }
  0x77   :  { %v524_v27 = vpop.xlane.xlu0 %47  ;;  %v74_v41 = vsub.f32 %v419_v0, %v520_v25  ;;  %v72_v55 = vsub.f32 %v424_v1, %v522_v26 }
  0x78   :  { %v70_v30 = vsub.f32 %v429_v2, %v524_v27 }
  0x79   :  { %v86_v47 = vmul.f32 1.442695, %v74_v41  ;;  %v82_v59 = vmul.f32 1.442695, %v72_v55 }
  0x7a   :  { %v78_v36 = vmul.f32 1.442695, %v70_v30 }
  0x7e   :  { %v526_v28 = vpop.xlane.xlu2 %62  ;;  %v528_v29 = vpop.xlane.xlu1 %56 }
  0x7f   :  { %v532_v31 = vpop.xlane.xlu0 %50  ;;  %v73_v34 = vsub.f32 %v445_v8, %v528_v29 }
  0x80   :  { %v71_v33 = vsub.f32 %v450_v9, %v532_v31 }
  0x81   :  { %v84_v38 = vmul.f32 1.442695, %v73_v34 }
  0x82   :  { %v80_v35 = vmul.f32 1.442695, %v71_v33 }
  0x84   :  { %335 = vpow2.f32 %v80_v35 }
  0x85   :  { %337 = vpow2.f32 %v78_v36 }
  0x86   :  { %v146_v39 = vpop.permute.xlu2 %145  ;;  %339 = vpow2.f32 %v84_v38  ;;  %v550_v51 = vpop.xlane.xlu1 %68 }
  0x87   :  { %vm168_vm1 = vcmp.eq.s32.totalorder %v538_v37, %v146_v39  ;;  %v541_v40 = vpop.xlane.xlu0 %65  ;;  %341 = vpow2.f32 %v86_v47  ;;  %v77_v54 = vsub.f32 %v461_v13, %v550_v51 }
  0x88   :  { %v176_v42 = vsel %vm168_vm1, %v429_v2, 0.0  ;;  %v76_v45 = vsub.f32 %v466_v14, %v541_v40  ;;  %v75_v2 = vsub.f32 %v440_v7, %v526_v28  ;;  %vm241_vm1 = vcmp.ne.s32.totalorder %v511_v23, 4294967196 }
  0x89   :  { %v184_v43 = vsel %vm45_vm0, %v176_v42, 0.0  ;;  %v92_v57 = vmul.f32 1.442695, %v77_v54 }
  0x8a   :  { %v336_v44 = vpop.eup %335  ;;  %185 = vadd.xlane.f32.xlu0 %v184_v43  ;;  %v90_v50 = vmul.f32 1.442695, %v76_v45  ;;  %v88_v10 = vmul.f32 1.442695, %v75_v2 }
  0x8b   :  { %v97_v46 = vsel %vm45_vm0, %v336_v44, 0.0  ;;  %v338_v48 = vpop.eup %337 }
  0x8c   :  { %98 = vadd.xlane.f32.xlu2 %v97_v46  ;;  %v340_v49 = vpop.eup %339  ;;  %v94_v52 = vsel %vm45_vm0, %v338_v48, 0.0  ;;  %343 = vpow2.f32 %v90_v50 }
  0x8d   :  { %v103_v53 = vsel %vm45_vm0, %v340_v49, 0.0  ;;  %v342_v56 = vpop.eup %341  ;;  %345 = vpow2.f32 %v92_v57 }
  0x8e   :  { %v155_v60 = vpop.permute.xlu2 %154  ;;  %v106_v61 = vsel %vm45_vm0, %v342_v56, 0.0  ;;  %347 = vpow2.f32 %v82_v59  ;;  %v38_v56 = vld [vmem:[%s642_s2 + $0x8] sm:$0xff] }
  0x8f   :  { %349 = vpow2.f32 %v88_v10  ;;  %vm171_vm6 = vcmp.eq.s32.totalorder %v538_v37, %v155_v60 }
  0x92   :  { %95 = vadd.xlane.f32.xlu0 %v94_v52  ;;  %v344_v58 = vpop.eup %343 }
  0x93   :  { %v112_v63 = vsel %vm45_vm0, %v344_v58, 0.0  ;;  %v346_v6 = vpop.eup %345 }
  0x94   :  { %104 = vadd.xlane.f32.xlu2 %v103_v53  ;;  %v348_v15 = vpop.eup %347  ;;  %v115_v30 = vsel %vm45_vm0, %v346_v6, 0.0 }
  0x95   :  { %v350_v35 = vpop.eup %349 }
  0x96   :  { %v158_v16 = vpop.permute.xlu2 %157  ;;  %v109_v38 = vsel %vm45_vm0, %v350_v35, 0.0 }
  0x97   :  { %vm172_vm4 = vcmp.eq.s32.totalorder %v538_v37, %v158_v16 }
  0x98   :  { %v180_v33 = vsel %vm172_vm4, %v419_v0, 0.0 }
  0x99   :  { %v196_v36 = vsel %vm45_vm0, %v180_v33, 0.0 }
  0x9a   :  { %v149_v62 = vpop.permute.xlu0 %148  ;;  %107 = vadd.xlane.f32.xlu0 %v106_v61 }
  0x9b   :  { %vm169_vm2 = vcmp.eq.s32.totalorder %v538_v37, %v149_v62 }
  0x9c   :  { %113 = vadd.xlane.f32.xlu2 %v112_v63  ;;  %v177_v3 = vsel %vm169_vm2, %v450_v9, 0.0  ;;  %v100_v9 = vsel %vm45_vm0, %v348_v15, 0.0  ;;  %vm19_vm2 = vcmask 0  }
  0x9d   :  { %v187_v4 = vsel %vm45_vm0, %v177_v3, 0.0 }
  0x9e   :  { %188 = vadd.xlane.f32.xlu1 %v187_v4  ;;  %v152_v5 = vpop.permute.xlu1 %151  ;;  %v164_v42 = vpop.permute.xlu2 %163 }
  0x9f   :  { %vm170_vm3 = vcmp.eq.s32.totalorder %v538_v37, %v152_v5  ;;  %vm174_vm8 = vcmp.eq.s32.totalorder %v538_v37, %v164_v42 }
  0xa0   :  { %v178_v11 = vsel %vm170_vm3, %v424_v1, 0.0  ;;  %v182_v44 = vsel %vm174_vm8, %v466_v14, 0.0  ;;  %v37_v14 = vld [vmem:[%s642_s2] sm:$0xff] }
  0xa1   :  { %v190_v12 = vsel %vm45_vm0, %v178_v11, 0.0  ;;  %v202_v45 = vsel %vm45_vm0, %v182_v44, 0.0 }
  0xa2   :  { %191 = vadd.xlane.f32.xlu0 %v190_v12 }
  0xa4   :  { %116 = vadd.xlane.f32.xlu2 %v115_v30 }
  0xa6   :  { %101 = vadd.xlane.f32.xlu1 %v100_v9  ;;  %v161_v32 = vpop.permute.xlu1 %160  ;;  %v39_v9 = vld [vmem:[%s642_s2 + $0x10] sm:$0xff] }
  0xa7   :  { %vm173_vm5 = vcmp.eq.s32.totalorder %v538_v37, %v161_v32 }
  0xa8   :  { %v181_v1 = vsel %vm173_vm5, %v440_v7, 0.0  ;;  %v179_v7 = vsel %vm171_vm6, %v445_v8, 0.0 }
  0xa9   :  { %v199_v34 = vsel %vm45_vm0, %v181_v1, 0.0  ;;  %v193_v43 = vsel %vm45_vm0, %v179_v7, 0.0 }
  0xaa   :  { %200 = vadd.xlane.f32.xlu0 %v199_v34 }
  0xac   :  { %197 = vadd.xlane.f32.xlu2 %v196_v36  ;;  %v41_v36 = vld [vmem:[%s642_s2 + $0x20] sm:$0xff] }
  0xae   :  { %110 = vadd.xlane.f32.xlu1 %v109_v38  ;;  %v167_v39 = vpop.permute.xlu1 %166 }
  0xaf   :  { %vm175_vm7 = vcmp.eq.s32.totalorder %v538_v37, %v167_v39 }
  0xb0   :  { %v183_v41 = vsel %vm175_vm7, %v461_v13, 0.0 }
  0xb1   :  { %v205_v0 = vsel %vm45_vm0, %v183_v41, 0.0  ;;  %vm242_vm0 = vcmp.ne.s32.totalorder %v516_v24, 4294967196 }
  0xb4   :  { %206 = vadd.xlane.f32.xlu2 %v205_v0 }
  0xb6   :  { %194 = vadd.xlane.f32.xlu1 %v193_v43 }
  0xbe   :  { %203 = vadd.xlane.f32.xlu1 %v202_v45 }
  0xfd   :  { %v186_v46 = vpop.xlane.xlu0 %185 }
  0xff   :  { %v99_v47 = vpop.xlane.xlu2 %98 }
 0x100   :  { %351 = vlog2.f32 %v99_v47 }
 0x105   :  { %v96_v13 = vpop.xlane.xlu0 %95 }
 0x106   :  { %353 = vlog2.f32 %v96_v13  ;;  %v352_v49 = vpop.eup %351  ;;  %v42_v13 = vld [vmem:[%s642_s2 + $0x28] sm:$0xff] }
 0x107   :  { %v105_v48 = vpop.xlane.xlu2 %104  ;;  %v121_v50 = vmul.f32 0.6931472, %v352_v49 }
 0x109   :  { %v135_v37 = vadd.f32 %v121_v50, %v532_v31 }
 0x10c   :  { %v354_v8 = vpop.eup %353 }
 0x10d   :  { %v119_v52 = vmul.f32 0.6931472, %v354_v8 }
 0x10f   :  { %v134_v53 = vadd.f32 %v119_v52, %v524_v27  ;;  %v114_v54 = vpop.xlane.xlu2 %113  ;;  %v108_v27 = vpop.xlane.xlu0 %107 }
 0x110   :  { %355 = vlog2.f32 %v108_v27 }
 0x111   :  { %v251_v55 = vsub.f32 %v134_v53, %v186_v46  ;;  %v189_v57 = vpop.xlane.xlu1 %188 }
 0x112   :  { %v252_v58 = vsub.f32 %v135_v37, %v189_v57 }
 0x113   :  { %v259_v59 = vmul.f32 %v251_v55, %v37_v14 }
 0x114   :  { %v260_v60 = vmul.f32 %v252_v58, %v38_v56 }
 0x115   :  { %v267_v61 = vsel %vm235_vm9, %v259_v59, 0.0 }
 0x116   :  { %v268_v62 = vsel %vm236_vm10, %v260_v60, 0.0  ;;  %v277_v63 = vsel %vm276_vm11, %v267_v61, 0.0  ;;  %v356_v17 = vpop.eup %355 }
 0x117   :  { %v278_v31 = vsel %vm276_vm11, %v268_v62, 0.0  ;;  %v117_v2 = vpop.xlane.xlu2 %116  ;;  %v127_v18 = vmul.f32 0.6931472, %v356_v17  ;;  %v192_v15 = vpop.xlane.xlu0 %191 }
 0x118   :  { %v279_v3 = vadd.f32 %v278_v31, %v277_v63 }
 0x119   :  { %v102_v4 = vpop.xlane.xlu1 %101  ;;  %v138_v32 = vadd.f32 %v127_v18, %v520_v25  ;;  %v40_v25 = vld [vmem:[%s642_s2 + $0x18] sm:$0xff] }
 0x11a   :  { %357 = vlog2.f32 %v102_v4  ;;  %v394_v4 = vmov 0.0  }
 0x11b   :  { %359 = vlog2.f32 %v105_v48  ;;  %20 = vst.msk [vmem:[#allocation2] sm:$0x1] %vm19_vm2, %v394_v4 }
 0x11c   :  { %361 = vlog2.f32 %v117_v2 }
 0x11f   :  { %v198_v11 = vpop.xlane.xlu2 %197  ;;  %v201_v48 = vpop.xlane.xlu0 %200 }
 0x120   :  { %v358_v5 = vpop.eup %357  ;;  %v255_v34 = vsub.f32 %v138_v32, %v198_v11 }
 0x121   :  { %v360_v6 = vpop.eup %359  ;;  %v123_v10 = vmul.f32 0.6931472, %v358_v5  ;;  %v111_v12 = vpop.xlane.xlu1 %110 }
 0x122   :  { %363 = vlog2.f32 %v111_v12  ;;  %v125_v30 = vmul.f32 0.6931472, %v360_v6  ;;  %v362_v33 = vpop.eup %361  ;;  %v263_v43 = vmul.f32 %v255_v34, %v41_v36  ;;  %v275_v11 = vld [vmem:[#allocation2] sm:$0x1] }
 0x123   :  { %365 = vlog2.f32 %v114_v54  ;;  %v136_v16 = vadd.f32 %v123_v10, %v522_v26  ;;  %v133_v39 = vmul.f32 0.6931472, %v362_v33 }
 0x124   :  { %v137_v26 = vadd.f32 %v125_v30, %v528_v29  ;;  %v271_v52 = vsel %vm239_vm14, %v263_v43, 0.0 }
 0x125   :  { %v253_v1 = vsub.f32 %v136_v16, %v192_v15  ;;  %v141_v49 = vadd.f32 %v133_v39, %v550_v51  ;;  %v284_v55 = vsel %vm276_vm11, %v271_v52, 0.0 }
 0x127   :  { %v261_v35 = vmul.f32 %v253_v1, %v39_v9  ;;  %v207_v29 = vpop.xlane.xlu2 %206 }
 0x128   :  { %v364_v38 = vpop.eup %363  ;;  %v258_v19 = vsub.f32 %v141_v49, %v207_v29 }
 0x129   :  { %v366_v41 = vpop.eup %365  ;;  %v269_v0 = vsel %vm237_vm12, %v261_v35, 0.0  ;;  %v129_v7 = vmul.f32 0.6931472, %v364_v38  ;;  %v195_v42 = vpop.xlane.xlu1 %194 }
 0x12a   :  { %v280_v20 = vsel %vm276_vm11, %v269_v0, 0.0  ;;  %v254_v44 = vsub.f32 %v137_v26, %v195_v42  ;;  %v131_v47 = vmul.f32 0.6931472, %v366_v41 }
 0x12b   :  { %v281_v45 = vadd.f32 %v280_v20, %v279_v3  ;;  %v139_v46 = vadd.f32 %v129_v7, %v526_v28  ;;  %v44_v28 = vld [vmem:[%s642_s2 + $0x38] sm:$0xff] }
 0x12c   :  { %v262_v8 = vmul.f32 %v254_v44, %v40_v25  ;;  %v140_v37 = vadd.f32 %v131_v47, %v541_v40  ;;  %v266_v58 = vmul.f32 %v258_v19, %v44_v28 }
 0x12d   :  { %v256_v50 = vsub.f32 %v139_v46, %v201_v48 }
 0x12e   :  { %v270_v53 = vsel %vm238_vm13, %v262_v8, 0.0  ;;  %v274_v62 = vsel %vm242_vm0, %v266_v58, 0.0 }
 0x12f   :  { %v264_v21 = vmul.f32 %v256_v50, %v42_v13  ;;  %v282_v54 = vsel %vm276_vm11, %v270_v53, 0.0  ;;  %v290_v2 = vsel %vm276_vm11, %v274_v62, 0.0 }
 0x130   :  { %v283_v14 = vadd.f32 %v282_v54, %v281_v45 }
 0x131   :  { %v272_v51 = vsel %vm240_vm15, %v264_v21, 0.0  ;;  %v204_v56 = vpop.xlane.xlu1 %203 }
 0x132   :  { %v286_v57 = vsel %vm276_vm11, %v272_v51, 0.0  ;;  %v257_v59 = vsub.f32 %v140_v37, %v204_v56  ;;  %v285_v27 = vadd.f32 %v284_v55, %v283_v14 }
 0x134   :  { %v265_v60 = vmul.f32 %v257_v59, %v43_v22  ;;  %v287_v61 = vadd.f32 %v286_v57, %v285_v27 }
 0x136   :  { %v273_v40 = vsel %vm241_vm1, %v265_v60, 0.0 }
 0x137   :  { %v288_v63 = vsel %vm276_vm11, %v273_v40, 0.0 }
 0x138   :  { %v289_v31 = vadd.f32 %v288_v63, %v287_v61 }
 0x13a   :  { %v291_v3 = vadd.f32 %v290_v2, %v289_v31 }
 0x13c   :  { %292 = vadd.xlane.f32.xlu0 %v291_v3 }
 0x1af   :  { %v293_v17 = vpop.xlane.xlu0 %292 }
 0x1b0   :  { %v294_v5 = vrot.slane %v293_v17, 4 }
 0x1b2   :  { %v295_v24 = vadd.f32 %v294_v5, %v293_v17 }
 0x1b4   :  { %v296_v18 = vrot.slane %v295_v24, 2 }
 0x1b6   :  { %v297_v23 = vadd.f32 %v296_v18, %v295_v24 }
 0x1b8   :  { %v298_v6 = vrot.slane %v297_v23, 1 }
 0x1ba   :  { %v299_v10 = vadd.f32 %v298_v6, %v297_v23 }
 0x1bc   :  { %327 = vpush %v299_v10 }
 0x1ed   :  { %s328_s2 = spop %327 }
 0x1ee   :  { %v301_v12 = vstv %s328_s2 }
 0x1ef   :  { %v302_v15 = vadd.f32 %v301_v12, %v275_v11 }
 0x1f1   :  { %304 = vst.msk [vmem:[#allocation2] sm:$0x1] %vm19_vm2, %v302_v15 }
 0x1f8   :  { %v308_v16 = vld [vmem:[#allocation2] sm:$0x1] }
 0x1f9   :  { %v309_v30 = vmul.f32 0.015625, %v308_v16 }
 0x1fb   :  { %310 = vst.msk [vmem:[#allocation2] sm:$0x1] %vm19_vm2, %v309_v30 }
 0x1fc   :  { %321 = dma.vmem_to_hbm [thread:$0]  %s317_s0, 16, %s319_s7, [#allocation3]  }
 0x1fd   :  { %391 = dma.done.wait [#allocation3], 16  }
 0x1fe   :  { %392 = vsyncadd [#allocation3], 4294967280 }
 0x1ff   :  { %326 = vsyncpa [#allocation3], 1 }

</bundles_post_ra>
